<compile_context>
chip_gen: v5e
topology: v5e:2x2
jax: 0.10.0
libtpu: 0.0.40
codegen_flags: <defaults>
</compile_context>

<pallas_src>
import jax
import jax.numpy as jnp
from jax.experimental import pallas as pl
from jax.experimental.pallas import tpu as pltpu

EPS = 1e-5  # nn.LayerNorm default


def prenorm_kernel(x_ref, g_ref, b_ref, w_ref, bias_ref, o_ref):
    # x_ref: (TR, D) row tile; g/b: (1, D); w_ref: (D, TN); bias_ref: (1, TN).
    x = x_ref[...].astype(jnp.float32)
    mean = jnp.mean(x, axis=-1, keepdims=True)
    xc = x - mean
    var = jnp.mean(xc * xc, axis=-1, keepdims=True)
    inv = jax.lax.rsqrt(var + EPS)
    # Fold gamma into inv-std: y = xc * (inv * gamma) + beta  (one mul + one add).
    y = xc * (inv * g_ref[...].astype(jnp.float32)) + b_ref[...].astype(jnp.float32)
    # fn = Linear(D, D): feed the MXU in W's native dtype (bf16 at full rate),
    # accumulate in f32.
    out = jnp.dot(y.astype(w_ref.dtype), w_ref[...],
                  preferred_element_type=jnp.float32)
    out = out + bias_ref[...].astype(jnp.float32)
    o_ref[...] = out.astype(o_ref.dtype)


def prenorm(x, gamma, beta, w, bias, *, tile_rows=512, tile_cols=512):
    """x: [B, S, D] -> fn(LayerNorm(x)) with fn = Linear(D, D) (weight w, bias)."""
    B, S, D = x.shape
    N = B * S
    out_dtype = x.dtype

    # Row tile: respect sublane packing (bf16 packs 16 rows/vreg, f32 packs 8),
    # shrink for tiny N, and pad N up to a multiple of the tile.
    sub = 16 if x.dtype == jnp.bfloat16 else 8
    tr = min(tile_rows, pl.cdiv(N, sub) * sub)
    tr = max(sub, (tr // sub) * sub)
    Np = pl.cdiv(N, tr) * tr

    # Column tile for the weight: only tile if D splits into lane-aligned
    # chunks; otherwise keep the full D (block == full dim is always legal).
    if D % tile_cols == 0 and tile_cols % 128 == 0:
        tn = tile_cols
    else:
        tn = D

    x2 = x.reshape(N, D)
    if Np != N:
        # Zero-padded rows produce finite garbage (var=0 -> rsqrt(eps)); sliced off below.
        x2 = jnp.pad(x2, ((0, Np - N), (0, 0)))
    gamma2 = gamma.reshape(1, D)
    beta2 = beta.reshape(1, D)
    bias2 = bias.reshape(1, D)

    # Scoped-VMEM budget sized to the tiles (double-buffered x/out + weight tile
    # + f32 temporaries), clamped to sane bounds.
    x_bytes = jnp.dtype(x.dtype).itemsize
    w_bytes = jnp.dtype(w.dtype).itemsize
    est = (2 * tr * D * x_bytes          # x tiles (double-buffered)
           + 2 * tr * tn * x_bytes       # out tiles (double-buffered)
           + 2 * D * tn * w_bytes        # weight tile
           + tr * D * 4 + tr * tn * 4    # f32 temporaries inside the kernel
           + 6 * D * 4)                  # gamma/beta/bias
    vmem_limit = int(min(128 * 1024 * 1024, max(32 * 1024 * 1024, 2 * est)))

    grid = (Np // tr, D // tn)

    out = pl.pallas_call(
        prenorm_kernel,
        out_shape=jax.ShapeDtypeStruct((Np, D), out_dtype),
        grid_spec=pltpu.PrefetchScalarGridSpec(
            num_scalar_prefetch=0,
            grid=grid,
            in_specs=[
                pl.BlockSpec((tr, D), lambda i, j: (i, 0)),   # x rows (constant over j)
                pl.BlockSpec((1, D), lambda i, j: (0, 0)),    # gamma (resident)
                pl.BlockSpec((1, D), lambda i, j: (0, 0)),    # beta  (resident)
                pl.BlockSpec((D, tn), lambda i, j: (0, j)),   # fn weight column tile
                pl.BlockSpec((1, tn), lambda i, j: (0, j)),   # fn bias column tile
            ],
            out_specs=pl.BlockSpec((tr, tn), lambda i, j: (i, j)),
        ),
        compiler_params=pltpu.CompilerParams(
            dimension_semantics=("parallel", "arbitrary"),
            vmem_limit_bytes=vmem_limit,
        ),
    )(x2, gamma2, beta2, w, bias2)

    if Np != N:
        out = out[:N]
    return out.reshape(B, S, D)


def prenorm_ref(x, gamma, beta, w, bias):
    xf = x.astype(jnp.float32)
    mean = jnp.mean(xf, axis=-1, keepdims=True)
    var = jnp.mean((xf - mean) ** 2, axis=-1, keepdims=True)
    y = (xf - mean) * jax.lax.rsqrt(var + EPS) * gamma + beta
    return (y @ w.astype(jnp.float32) + bias).astype(x.dtype)


if __name__ == "__main__":
    B, S, D = 2, 8, 32
    key = jax.random.PRNGKey(0)
    kx, kg, kb, kw, kbias = jax.random.split(key, 5)

    x = jax.random.normal(kx, (B, S, D), dtype=jnp.float32)
    # LayerNorm params (PyTorch init: weight=1, bias=0) — perturbed slightly but
    # deterministically so the affine path is exercised.
    gamma = jnp.ones((D,), jnp.float32) + 0.01 * jax.random.normal(kg, (D,))
    beta = 0.01 * jax.random.normal(kb, (D,))
    # fn = Linear(D, D), deterministic init (kept f32 at this tiny size; pass
    # bf16 weights in production to hit full MXU rate).
    w = jax.random.normal(kw, (D, D), dtype=jnp.float32) / jnp.sqrt(D)
    bias = 0.01 * jax.random.normal(kbias, (D,))

    out = prenorm(x, gamma, beta, w, bias)
    out = jax.block_until_ready(out)

    ref = prenorm_ref(x, gamma, beta, w, bias)
    assert out.shape == (B, S, D)
    assert jnp.allclose(out, ref, atol=1e-4, rtol=1e-4)
    print("KERNEL_OK")
</pallas_src>

<mosaic_0001>
module attributes {stable_mosaic.version = 11 : i64} {
  func.func @prenorm_kernel(%arg0: i32, %arg1: i32, %arg2: memref<16x32xf32, #tpu.memory_space<vmem>>, %arg3: memref<1x32xf32, #tpu.memory_space<vmem>>, %arg4: memref<1x32xf32, #tpu.memory_space<vmem>>, %arg5: memref<32x32xf32, #tpu.memory_space<vmem>>, %arg6: memref<1x32xf32, #tpu.memory_space<vmem>>, %arg7: memref<16x32xf32, #tpu.memory_space<vmem>>) attributes {dimension_semantics = [#tpu.dimension_semantics<parallel>, #tpu.dimension_semantics<arbitrary>], iteration_bounds = array<i64: 1, 1>, scalar_prefetch = 0 : i64, scratch_operands = 0 : i64, tpu.core_type = #tpu.core_type<tc>, window_params = [{transform_indices = @transform_0, window_bounds = array<i64: 16, 32>}, {pipeline_mode = #tpu.pipeline_mode<synchronous>, transform_indices = @transform_1, window_bounds = array<i64: 1, 32>}, {pipeline_mode = #tpu.pipeline_mode<synchronous>, transform_indices = @transform_2, window_bounds = array<i64: 1, 32>}, {transform_indices = @transform_3, window_bounds = array<i64: 32, 32>}, {transform_indices = @transform_4, window_bounds = array<i64: 1, 32>}, {transform_indices = @transform_5, window_bounds = array<i64: 16, 32>}]} {
    %c0 = arith.constant 0 : index
    %c0_0 = arith.constant 0 : index
    %0 = vector.load %arg2[%c0, %c0_0] : memref<16x32xf32, #tpu.memory_space<vmem>>, vector<16x32xf32>
    %cst = arith.constant dense<0.000000e+00> : vector<16xf32>
    %1 = vector.multi_reduction <add>, %0, %cst [1] : vector<16x32xf32> to vector<16xf32>
    %2 = vector.shape_cast %1 : vector<16xf32> to vector<16x1xf32>
    %cst_1 = arith.constant 3.200000e+01 : f32
    %3 = vector.broadcast %cst_1 : f32 to vector<16x1xf32>
    %4 = arith.divf %2, %3 : vector<16x1xf32>
    %5 = vector.broadcast %4 : vector<16x1xf32> to vector<16x32xf32>
    %6 = arith.subf %0, %5 : vector<16x32xf32>
    %7 = arith.mulf %6, %6 : vector<16x32xf32>
    %cst_2 = arith.constant dense<0.000000e+00> : vector<16xf32>
    %8 = vector.multi_reduction <add>, %7, %cst_2 [1] : vector<16x32xf32> to vector<16xf32>
    %9 = vector.shape_cast %8 : vector<16xf32> to vector<16x1xf32>
    %cst_3 = arith.constant 3.200000e+01 : f32
    %10 = vector.broadcast %cst_3 : f32 to vector<16x1xf32>
    %11 = arith.divf %9, %10 : vector<16x1xf32>
    %cst_4 = arith.constant 9.99999974E-6 : f32
    %12 = vector.broadcast %cst_4 : f32 to vector<16x1xf32>
    %13 = arith.addf %11, %12 : vector<16x1xf32>
    %14 = math.rsqrt %13 : vector<16x1xf32>
    %c0_5 = arith.constant 0 : index
    %c0_6 = arith.constant 0 : index
    %15 = vector.load %arg3[%c0_5, %c0_6] : memref<1x32xf32, #tpu.memory_space<vmem>>, vector<1x32xf32>
    %16 = vector.broadcast %14 : vector<16x1xf32> to vector<16x32xf32>
    %17 = vector.broadcast %15 : vector<1x32xf32> to vector<16x32xf32>
    %18 = arith.mulf %16, %17 : vector<16x32xf32>
    %19 = arith.mulf %6, %18 : vector<16x32xf32>
    %c0_7 = arith.constant 0 : index
    %c0_8 = arith.constant 0 : index
    %20 = vector.load %arg4[%c0_7, %c0_8] : memref<1x32xf32, #tpu.memory_space<vmem>>, vector<1x32xf32>
    %21 = vector.broadcast %20 : vector<1x32xf32> to vector<16x32xf32>
    %22 = arith.addf %19, %21 : vector<16x32xf32>
    %c0_9 = arith.constant 0 : index
    %c0_10 = arith.constant 0 : index
    %23 = vector.load %arg5[%c0_9, %c0_10] : memref<32x32xf32, #tpu.memory_space<vmem>>, vector<32x32xf32>
    %cst_11 = arith.constant dense<0.000000e+00> : vector<16x32xf32>
    %24 = tpu.matmul %22, %23, %cst_11 {dimension_numbers = #tpu.dot_dimension_numbers<[1], [0], [0], [1], [0, 0, 1, 1], [], []>} : vector<16x32xf32>, vector<32x32xf32>, vector<16x32xf32> -> vector<16x32xf32>
    %c0_12 = arith.constant 0 : index
    %c0_13 = arith.constant 0 : index
    %25 = vector.load %arg6[%c0_12, %c0_13] : memref<1x32xf32, #tpu.memory_space<vmem>>, vector<1x32xf32>
    %26 = vector.broadcast %25 : vector<1x32xf32> to vector<16x32xf32>
    %27 = arith.addf %24, %26 : vector<16x32xf32>
    %c0_14 = arith.constant 0 : index
    %c0_15 = arith.constant 0 : index
    %28 = vector.load %arg7[%c0_14, %c0_15] : memref<16x32xf32, #tpu.memory_space<vmem>>, vector<16x32xf32>
    tpu.vector_store %arg7[%c0_14, %c0_15], %27 {strides = array<i32>} : memref<16x32xf32, #tpu.memory_space<vmem>>, vector<16x32xf32>,
    return
  }
  func.func @transform_0(%arg0: i32, %arg1: i32) -> (i32, i32) {
    %c0_i32 = arith.constant 0 : i32
    %c0_i32_0 = arith.constant 0 : i32
    return %arg0, %c0_i32 : i32, i32
  }
  func.func @transform_1(%arg0: i32, %arg1: i32) -> (i32, i32) {
    %c0_i32 = arith.constant 0 : i32
    %c0_i32_0 = arith.constant 0 : i32
    %c0_i32_1 = arith.constant 0 : i32
    return %c0_i32, %c0_i32_0 : i32, i32
  }
  func.func @transform_2(%arg0: i32, %arg1: i32) -> (i32, i32) {
    %c0_i32 = arith.constant 0 : i32
    %c0_i32_0 = arith.constant 0 : i32
    %c0_i32_1 = arith.constant 0 : i32
    return %c0_i32, %c0_i32_0 : i32, i32
  }
  func.func @transform_3(%arg0: i32, %arg1: i32) -> (i32, i32) {
    %c0_i32 = arith.constant 0 : i32
    %c0_i32_0 = arith.constant 0 : i32
    return %c0_i32, %arg1 : i32, i32
  }
  func.func @transform_4(%arg0: i32, %arg1: i32) -> (i32, i32) {
    %c0_i32 = arith.constant 0 : i32
    %c0_i32_0 = arith.constant 0 : i32
    return %c0_i32, %arg1 : i32, i32
  }
  func.func @transform_5(%arg0: i32, %arg1: i32) -> (i32, i32) {
    %c0_i32 = arith.constant 0 : i32
    return %arg0, %arg1 : i32, i32
  }
}

</mosaic_0001>

<bundles_post_ra>
// kernel: tpu_custom_call.1
= control target key start
LH: loop header
LB: loop body
LE: loop exit
PB: predicated region body
PF: predicated region fallthrough
CT: control target
= control target key end

     0   :  { %10 = vsyncpa [#allocation3], 0  ;;  %s387_s0 = inlined_call_operand.hbm [shape: f32[16,32], index: 0, kind: input, shape index: {}]   ;;  %s388_s1 = inlined_call_operand.hbm [shape: f32[1,32], index: 1, kind: input, shape index: {}]   ;;  %s389_s2 = inlined_call_operand.vmem [shape: f32[1,32], index: 2, kind: input, shape index: {}]   ;;  %s390_s3 = inlined_call_operand.hbm [shape: f32[32,32], index: 3, kind: input, shape index: {}]   ;;  %s391_s4 = inlined_call_operand.vmem [shape: f32[1,32], index: 4, kind: input, shape index: {}]   ;;  %s392_s5 = inlined_call_operand.hbm [shape: f32[16,32], index: 5, kind: output, shape index: {}]  }
   0x1   :  { %11 = vsyncpa [#allocation6], 0  ;;  %s31_s20 = sshll.u32 %s388_s1, 4  ;;  %s32_s20 = int_to_ptr.hbm [resolvable:$true] %s31_s20 }
   0x2   :  { %12 = vsyncpa [#allocation4], 0  ;;  %s315_s21 = smov [#allocation5]   ;;  %s17_s25 = sshll.u32 %s387_s0, 4  ;;  %s18_s25 = int_to_ptr.hbm [resolvable:$true] %s17_s25 }
   0x3   :  { %s33_s22 = sshll.u32 %s315_s21, 4  ;;  %s316_s26 = smov [#allocation2]   ;;  %s34_s22 = int_to_ptr.vmem [resolvable:$true] %s33_s22 }
   0x4   :  { %36 = dma.hbm_to_vmem [thread:$0]  %s32_s20, 16, %s34_s22, [#allocation6]  }
   0x5   :  { %s19_s27 = sshll.u32 %s316_s26, 4  ;;  %s317_s28 = smov 128   ;;  %s20_s27 = int_to_ptr.vmem [resolvable:$true] %s19_s27 }
   0x6   :  { %s318_s29 = smov 8   ;;  %s43_s6 = sshll.u32 %s390_s3, 4  ;;  %s44_s6 = int_to_ptr.hbm [resolvable:$true] %s43_s6 }
   0x7   :  { %25 = dma.hbm_to_vmem [thread:$0]  %s18_s25, 256, %s20_s27, [#allocation3], %s317_s28, %s317_s28, %s318_s29  }
   0x8   :  { %s319_s7 = smov [#allocation7]  }
   0x9   :  { %s45_s8 = sshll.u32 %s319_s7, 4  ;;  %s46_s8 = int_to_ptr.vmem [resolvable:$true] %s45_s8 }
   0xa   :  { %51 = dma.hbm_to_vmem [thread:$0]  %s44_s6, 512, %s46_s8, [#allocation6], %s317_s28, %s317_s28, %s318_s29  }
   0xb   :  { %309 = dma.done.wait [#allocation3], 256  }
   0xc   :  { %310 = vsyncadd [#allocation3], 4294967040 }
   0xd   :  { %311 = dma.done.wait [#allocation6], 528  }
   0xe   :  { %312 = vsyncadd [#allocation6], 4294966768  ;;  %vm68_vm0 = vcmask 261120   ;;  %v66_v0 = vld [vmem:[#allocation2] sm:$0xff]  ;;  %v67_v2 = vld [vmem:[#allocation2 + $0x8] sm:$0xff]  ;;  %v320_v4 = vmov 32.0  }
   0xf   :  { %v69_v1 = vsel %vm68_vm0, %v66_v0, 0.0  ;;  %v72_v3 = vsel %vm68_vm0, %v67_v2, 0.0  ;;  %207 = vrcp.f32 %v320_v4  ;;  %v135_v21 = vld [vmem:[#allocation7 + $0x18] sm:$0xff]  ;;  %v134_v22 = vld [vmem:[#allocation7 + $0x10] sm:$0xff]  ;;  %v133_v23 = vld [vmem:[#allocation7 + $0x8] sm:$0xff]  ;;  %s177_s14 = sshll.u32 %s392_s5, 4  ;;  %s178_s14 = int_to_ptr.hbm [resolvable:$true] %s177_s14 }
  0x10   :  { %70 = vadd.xlane.f32.xlu0 %v69_v1  ;;  %158 = vmatpush.msra.mxu0 %v135_v21  ;;  %v132_v24 = vld [vmem:[#allocation7] sm:$0xff]  ;;  %v204_v37 = vld [vmem:[#allocation5] ss:$0 sm:$0xff]  ;;  %v205_v43 = vld [vmem:[%s389_s2] ss:$0 sm:$0xff]  ;;  %s321_s2 = smov [#allocation8]  }
  0x11   :  { %193 = vmatpush.msra.mxu1 %v135_v21  ;;  %v206_v53 = vld [vmem:[%s391_s4] ss:$0 sm:$0xff]  ;;  %s175_s11 = sshll.u32 %s321_s2, 4  ;;  %s176_s11 = int_to_ptr.vmem [resolvable:$true] %s175_s11 }
  0x12   :  { %159 = vmatpush.msra.mxu0 %v134_v22 }
  0x13   :  { %194 = vmatpush.msra.mxu1 %v134_v22 }
  0x14   :  { %160 = vmatpush.msra.mxu0 %v133_v23 }
  0x15   :  { %v208_v5 = vpop.eup %207  ;;  %195 = vmatpush.msra.mxu1 %v133_v23 }
  0x16   :  { %v76_v6 = vmul.f32 32.0, %v208_v5  ;;  %vm80_vm1 = vweird.f32 %v208_v5  ;;  %161 = vmatpush.msra.mxu0 %v132_v24 }
  0x17   :  { %196 = vmatpush.msra.mxu1 %v132_v24 }
  0x18   :  { %73 = vadd.xlane.f32.xlu0 %v72_v3  ;;  %v77_v7 = vsub.f32 1.0, %v76_v6 }
  0x1a   :  { %v78_v8 = vmul.f32 %v208_v5, %v77_v7 }
  0x1c   :  { %v79_v9 = vadd.f32 %v208_v5, %v78_v8 }
  0x1e   :  { %v81_v10 = vsel %vm80_vm1, %v208_v5, %v79_v9 }
  0x83   :  { %v71_v11 = vpop.xlane.xlu0 %70 }
  0x84   :  { %v82_v12 = vmul.f32 %v81_v10, %v71_v11 }
  0x86   :  { %v84_v13 = vsub.f32 %v66_v0, %v82_v12 }
  0x88   :  { %v86_v14 = vmul.f32 %v84_v13, %v84_v13 }
  0x8a   :  { %v88_v15 = vsel %vm68_vm0, %v86_v14, 0.0 }
  0x8b   :  { %89 = vadd.xlane.f32.xlu1 %v88_v15  ;;  %v74_v16 = vpop.xlane.xlu0 %73 }
  0x8c   :  { %v83_v17 = vmul.f32 %v81_v10, %v74_v16 }
  0x8e   :  { %v85_v18 = vsub.f32 %v67_v2, %v83_v17 }
  0x90   :  { %v87_v19 = vmul.f32 %v85_v18, %v85_v18 }
  0x92   :  { %v91_v20 = vsel %vm68_vm0, %v87_v19, 0.0 }
  0x93   :  { %92 = vadd.xlane.f32.xlu1 %v91_v20 }
  0xfe   :  { %v90_v25 = vpop.xlane.xlu1 %89 }
  0xff   :  { %v94_v26 = vmul.f32 %v90_v25, %v81_v10 }
 0x101   :  { %v96_v27 = vadd.f32 1e-05, %v94_v26 }
 0x103   :  { %209 = vrsqrt.f32 %v96_v27  ;;  %vm104_vm3 = vweird.f32 %v96_v27 }
 0x106   :  { %v93_v28 = vpop.xlane.xlu1 %92 }
 0x107   :  { %v95_v29 = vmul.f32 %v93_v28, %v81_v10 }
 0x109   :  { %v210_v30 = vpop.eup %209  ;;  %v97_v31 = vadd.f32 1e-05, %v95_v29 }
 0x10a   :  { %v99_v32 = vmul.f32 %v210_v30, %v96_v27  ;;  %vm105_vm2 = vweird.f32 %v210_v30 }
 0x10b   :  { %211 = vrsqrt.f32 %v97_v31  ;;  %vm106_vm4 = vmor %vm104_vm3, %vm105_vm2  ;;  %vm114_vm6 = vweird.f32 %v97_v31 }
 0x10c   :  { %v100_v33 = vmul.f32 %v210_v30, %v99_v32 }
 0x10e   :  { %v101_v34 = vmul.f32 0.5, %v100_v33 }
 0x110   :  { %v102_v35 = vsub.f32 1.5, %v101_v34 }
 0x111   :  { %v212_v36 = vpop.eup %211 }
 0x112   :  { %v103_v38 = vmul.f32 %v210_v30, %v102_v35  ;;  %v109_v39 = vmul.f32 %v212_v36, %v97_v31  ;;  %vm115_vm5 = vweird.f32 %v212_v36 }
 0x113   :  { %vm116_vm7 = vmor %vm114_vm6, %vm115_vm5 }
 0x114   :  { %v107_v40 = vsel %vm106_vm4, %v210_v30, %v103_v38  ;;  %v110_v41 = vmul.f32 %v212_v36, %v109_v39 }
 0x115   :  { %v122_v42 = vmul.f32 %v204_v37, %v107_v40 }
 0x116   :  { %v111_v44 = vmul.f32 0.5, %v110_v41 }
 0x117   :  { %v124_v45 = vmul.f32 %v122_v42, %v84_v13 }
 0x118   :  { %v112_v46 = vsub.f32 1.5, %v111_v44 }
 0x119   :  { %v130_v47 = vadd.f32 %v205_v43, %v124_v45 }
 0x11a   :  { %v113_v48 = vmul.f32 %v212_v36, %v112_v46 }
 0x11b   :  { %191 = vmatmul.msk.f32.vlgmr.msra.gmra.mxu0 %vm68_vm0, %v130_v47 }
 0x11c   :  { %v117_v49 = vsel %vm116_vm7, %v212_v36, %v113_v48 }
 0x11d   :  { %v123_v50 = vmul.f32 %v204_v37, %v117_v49 }
 0x11f   :  { %v125_v51 = vmul.f32 %v123_v50, %v85_v18 }
 0x121   :  { %v131_v52 = vadd.f32 %v205_v43, %v125_v51 }
 0x123   :  { %192 = vmatmul.msk.f32.vlgmr.msra.gmra.mxu1 %vm68_vm0, %v131_v52 }
 0x198   :  { %v163_v54 = vpop.f32.mrf.mxu0 }
 0x199   :  { %v164_v55 = vadd.f32 %v206_v53, %v163_v54 }
 0x19b   :  { %169 = vst.msk [vmem:[#allocation8] sm:$0xff] %vm68_vm0, %v164_v55 }
 0x1a0   :  { %v166_v56 = vpop.f32.mrf.mxu1 }
 0x1a1   :  { %v167_v57 = vadd.f32 %v206_v53, %v166_v56 }
 0x1a3   :  { %170 = vst.msk [vmem:[#allocation8 + $0x8] sm:$0xff] %vm68_vm0, %v167_v57 }
 0x1a4   :  { %183 = dma.vmem_to_hbm [thread:$0]  %s176_s11, 256, %s178_s14, [#allocation4], %s317_s28, %s317_s28, %s318_s29  }
 0x1a5   :  { %313 = dma.done.wait [#allocation4], 256  }
 0x1a6   :  { %314 = vsyncadd [#allocation4], 4294967040 }
 0x1a7   :  { %188 = vsyncpa [#allocation3], 1 }
 0x1a8   :  { %189 = vsyncpa [#allocation6], 1 }
 0x1a9   :  { %190 = vsyncpa [#allocation4], 1 }

</bundles_post_ra>
